<compile_context>
chip_gen: v6e
topology: v6e:2x2x1
jax: 0.10.0
libtpu: 0.0.40
codegen_flags: <defaults>
</compile_context>

<pallas_src>
import jax
import jax.numpy as jnp
from jax.experimental import pallas as pl
from jax.experimental.pallas import tpu as pltpu

# Problem sizes (small, consistent with the module: wKAN(in_planes=16, ratio=1, k=5)).
N = 2              # batch
C = 16             # in_planes
RATIO = 1
CH = C // RATIO    # hidden channels of the channel-attention MLP
L = 128            # sequence length (maps exactly onto the 128-lane axis)
KS = 5             # spatial-attention conv kernel size
PAD = (KS - 1) // 2


def _wkan_kernel(x_ref, w1_ref, w2_ref, wsa_ref, o_ref):
    """Whole batch in one step.

    x_ref   : (N, C, L)  input block (channels on sublanes, length on lanes), VMEM
    w1_ref  : (CH, C)    fc1 weight (1x1 Conv1d, bias-free), VMEM
    w2_ref  : (C, CH)    fc2 weight (1x1 Conv1d, bias-free), VMEM
    wsa_ref : (2, KS)    spatial conv weight (in-channel, tap), SMEM (scalar taps)
    o_ref   : (N, C, L)  gated output, VMEM
    """
    # Load each batch slab once; N is tiny so they all stay resident in vregs.
    xs = [x_ref[n] for n in range(N)]                     # N x (C, L) f32

    # ---- channel attention: MLP batched across the whole block --------------
    # Pooled RHS P = [avg_0 .. avg_{N-1} | max_0 .. max_{N-1}]  of shape (C, 2N).
    cols = [jnp.mean(xn, axis=1, keepdims=True) for xn in xs]   # N x (C, 1)
    cols += [jnp.max(xn, axis=1, keepdims=True) for xn in xs]   # N x (C, 1)
    p = jnp.concatenate(cols, axis=1)                           # (C, 2N)

    h = jnp.maximum(
        jnp.dot(w1_ref[...], p, preferred_element_type=jnp.float32), 0.0)  # (CH, 2N)
    z = jnp.dot(w2_ref[...], h, preferred_element_type=jnp.float32)        # (C, 2N)
    ca = jax.nn.sigmoid(z[:, 0:N] + z[:, N:2 * N])              # (C, N)

    # Lane-index iota used for the conv boundary masks (built once per call).
    lane = jax.lax.broadcasted_iota(jnp.int32, (1, L), 1)

    # ---- per-element gating + spatial attention ------------------------------
    for n in range(N):                                     # N = 2, fully unrolled
        x1 = xs[n] * ca[:, n:n + 1]                        # (C, L) channel gate

        s_avg = jnp.mean(x1, axis=0, keepdims=True)        # (1, L)
        s_max = jnp.max(x1, axis=0, keepdims=True)         # (1, L)

        # Conv1d(2, 1, KS, padding=PAD), bias-free: roll (XLU) + mask per tap,
        # accumulated straight into a (1, L) accumulator.  Centre tap needs no
        # roll and no mask.
        acc = s_avg * wsa_ref[0, PAD] + s_max * wsa_ref[1, PAD]
        for k in range(KS):
            off = k - PAD                                  # -2..2
            if off == 0:
                continue
            sh_a = pltpu.roll(s_avg, (-off) % L, axis=1)   # sh[l] = s[l + off] (mod L)
            sh_m = pltpu.roll(s_max, (-off) % L, axis=1)
            valid = (lane < (L - off)) if off > 0 else (lane >= (-off))
            tap = sh_a * wsa_ref[0, k] + sh_m * wsa_ref[1, k]
            acc = acc + jnp.where(valid, tap, 0.0)

        sa = jax.nn.sigmoid(acc)                           # (1, L)
        o_ref[n] = x1 * sa                                 # (C, L), spatial gate


@jax.jit
def wkan_forward(x, w_fc1, w_fc2, w_sa):
    """x: (N, C, L) in PyTorch NCL layout.  Returns (N, C, L)."""
    return pl.pallas_call(
        _wkan_kernel,
        out_shape=jax.ShapeDtypeStruct((N, C, L), jnp.float32),
        grid_spec=pltpu.PrefetchScalarGridSpec(
            num_scalar_prefetch=0,
            grid=(1,),                                     # single block: whole tensor
            in_specs=[
                pl.BlockSpec((N, C, L), lambda i: (0, 0, 0)),
                pl.BlockSpec((CH, C), lambda i: (0, 0)),
                pl.BlockSpec((C, CH), lambda i: (0, 0)),
                pl.BlockSpec(memory_space=pltpu.MemorySpace.SMEM),  # conv taps as scalars
            ],
            out_specs=pl.BlockSpec((N, C, L), lambda i: (0, 0, 0)),
        ),
        compiler_params=pltpu.CompilerParams(
            dimension_semantics=("arbitrary",)),           # 1 step: no megacore split
    )(x, w_fc1, w_fc2, w_sa)


# ------------------------------ JAX reference ------------------------------
def _reference(x, w_fc1, w_fc2, w_sa):
    avg = jnp.mean(x, axis=2, keepdims=True)              # (N, C, 1)
    mx = jnp.max(x, axis=2, keepdims=True)                # (N, C, 1)

    def mlp(p):
        h = jax.nn.relu(jnp.einsum("oc,ncx->nox", w_fc1, p))
        return jnp.einsum("oc,ncx->nox", w_fc2, h)

    ca = jax.nn.sigmoid(mlp(avg) + mlp(mx))               # (N, C, 1)
    x1 = x * ca

    s_avg = jnp.mean(x1, axis=1, keepdims=True)           # (N, 1, L)
    s_max = jnp.max(x1, axis=1, keepdims=True)            # (N, 1, L)
    s = jnp.concatenate([s_avg, s_max], axis=1)           # (N, 2, L)
    y = jax.lax.conv_general_dilated(
        s, w_sa[None], window_strides=(1,), padding=[(PAD, PAD)],
        dimension_numbers=("NCH", "OIH", "NCH"))          # (N, 1, L)
    sa = jax.nn.sigmoid(y)
    return x1 * sa


if __name__ == "__main__":
    key = jax.random.PRNGKey(0)
    kx, k1, k2, k3 = jax.random.split(key, 4)
    x = jax.random.normal(kx, (N, C, L), jnp.float32)
    w_fc1 = jax.random.normal(k1, (CH, C), jnp.float32) * 0.3
    w_fc2 = jax.random.normal(k2, (C, CH), jnp.float32) * 0.3
    w_sa = jax.random.normal(k3, (2, KS), jnp.float32) * 0.3

    out = jax.block_until_ready(wkan_forward(x, w_fc1, w_fc2, w_sa))
    ref = jax.block_until_ready(_reference(x, w_fc1, w_fc2, w_sa))

    assert out.shape == (N, C, L), out.shape
    assert jnp.allclose(out, ref, rtol=1e-4, atol=1e-4), (
        float(jnp.max(jnp.abs(out - ref))))
    print("KERNEL_OK")
</pallas_src>

<mosaic_0001>
module attributes {stable_mosaic.version = 11 : i64} {
  func.func @_wkan_kernel(%arg0: i32, %arg1: memref<2x16x128xf32, #tpu.memory_space<vmem>>, %arg2: memref<16x16xf32, #tpu.memory_space<vmem>>, %arg3: memref<16x16xf32, #tpu.memory_space<vmem>>, %arg4: memref<2x5xf32, #tpu.memory_space<smem>>, %arg5: memref<2x16x128xf32, #tpu.memory_space<vmem>>) attributes {dimension_semantics = [#tpu.dimension_semantics<arbitrary>], iteration_bounds = array<i64: 1>, scalar_prefetch = 0 : i64, scratch_operands = 0 : i64, tpu.core_type = #tpu.core_type<tc>, window_params = [{pipeline_mode = #tpu.pipeline_mode<synchronous>, transform_indices = @transform_0, window_bounds = array<i64: 2, 16, 128>}, {pipeline_mode = #tpu.pipeline_mode<synchronous>, transform_indices = @transform_1, window_bounds = array<i64: 16, 16>}, {pipeline_mode = #tpu.pipeline_mode<synchronous>, transform_indices = @transform_2, window_bounds = array<i64: 16, 16>}, {transform_indices = @transform_3, window_bounds = array<i64: 2, 5>}, {pipeline_mode = #tpu.pipeline_mode<synchronous>, transform_indices = @transform_4, window_bounds = array<i64: 2, 16, 128>}]} {
    %c0 = arith.constant 0 : index
    %c0_0 = arith.constant 0 : index
    %c0_1 = arith.constant 0 : index
    %0 = vector.load %arg1[%c0, %c0_0, %c0_1] : memref<2x16x128xf32, #tpu.memory_space<vmem>>, vector<1x16x128xf32>
    %1 = vector.shape_cast %0 : vector<1x16x128xf32> to vector<16x128xf32>
    %c1 = arith.constant 1 : index
    %c0_2 = arith.constant 0 : index
    %c0_3 = arith.constant 0 : index
    %2 = vector.load %arg1[%c1, %c0_2, %c0_3] : memref<2x16x128xf32, #tpu.memory_space<vmem>>, vector<1x16x128xf32>
    %3 = vector.shape_cast %2 : vector<1x16x128xf32> to vector<16x128xf32>
    %cst = arith.constant dense<0.000000e+00> : vector<16xf32>
    %4 = vector.multi_reduction <add>, %1, %cst [1] : vector<16x128xf32> to vector<16xf32>
    %5 = vector.shape_cast %4 : vector<16xf32> to vector<16x1xf32>
    %cst_4 = arith.constant 1.280000e+02 : f32
    %6 = vector.broadcast %cst_4 : f32 to vector<16x1xf32>
    %7 = arith.divf %5, %6 : vector<16x1xf32>
    %cst_5 = arith.constant dense<0.000000e+00> : vector<16xf32>
    %8 = vector.multi_reduction <add>, %3, %cst_5 [1] : vector<16x128xf32> to vector<16xf32>
    %9 = vector.shape_cast %8 : vector<16xf32> to vector<16x1xf32>
    %cst_6 = arith.constant 1.280000e+02 : f32
    %10 = vector.broadcast %cst_6 : f32 to vector<16x1xf32>
    %11 = arith.divf %9, %10 : vector<16x1xf32>
    %cst_7 = arith.constant dense<0xFF800000> : vector<16xf32>
    %12 = vector.multi_reduction <maximumf>, %1, %cst_7 [1] : vector<16x128xf32> to vector<16xf32>
    %13 = vector.shape_cast %12 : vector<16xf32> to vector<16x1xf32>
    %cst_8 = arith.constant dense<0xFF800000> : vector<16xf32>
    %14 = vector.multi_reduction <maximumf>, %3, %cst_8 [1] : vector<16x128xf32> to vector<16xf32>
    %15 = vector.shape_cast %14 : vector<16xf32> to vector<16x1xf32>
    %16 = tpu.concatenate %7, %11, %13, %15 in 1 : vector<16x1xf32>, vector<16x1xf32>, vector<16x1xf32>, vector<16x1xf32> -> vector<16x4xf32>
    %c0_9 = arith.constant 0 : index
    %c0_10 = arith.constant 0 : index
    %17 = vector.load %arg2[%c0_9, %c0_10] : memref<16x16xf32, #tpu.memory_space<vmem>>, vector<16x16xf32>
    %cst_11 = arith.constant dense<0.000000e+00> : vector<16x4xf32>
    %18 = tpu.matmul %17, %16, %cst_11 {dimension_numbers = #tpu.dot_dimension_numbers<[1], [0], [0], [1], [0, 0, 1, 1], [], []>} : vector<16x16xf32>, vector<16x4xf32>, vector<16x4xf32> -> vector<16x4xf32>
    %cst_12 = arith.constant 0.000000e+00 : f32
    %19 = vector.broadcast %cst_12 : f32 to vector<16x4xf32>
    %20 = arith.maximumf %18, %19 : vector<16x4xf32>
    %c0_13 = arith.constant 0 : index
    %c0_14 = arith.constant 0 : index
    %21 = vector.load %arg3[%c0_13, %c0_14] : memref<16x16xf32, #tpu.memory_space<vmem>>, vector<16x16xf32>
    %cst_15 = arith.constant dense<0.000000e+00> : vector<16x4xf32>
    %22 = tpu.matmul %21, %20, %cst_15 {dimension_numbers = #tpu.dot_dimension_numbers<[1], [0], [0], [1], [0, 0, 1, 1], [], []>} : vector<16x16xf32>, vector<16x4xf32>, vector<16x4xf32> -> vector<16x4xf32>
    %23 = vector.extract_strided_slice %22 {offsets = [0, 0], sizes = [16, 2], strides = [1, 1]} : vector<16x4xf32> to vector<16x2xf32>
    %24 = vector.extract_strided_slice %22 {offsets = [0, 2], sizes = [16, 2], strides = [1, 1]} : vector<16x4xf32> to vector<16x2xf32>
    %25 = arith.addf %23, %24 : vector<16x2xf32>
    %26 = arith.negf %25 : vector<16x2xf32>
    %27 = math.exp %26 : vector<16x2xf32>
    %cst_16 = arith.constant 1.000000e+00 : f32
    %28 = vector.broadcast %cst_16 : f32 to vector<16x2xf32>
    %29 = arith.addf %28, %27 : vector<16x2xf32>
    %30 = arith.divf %28, %29 : vector<16x2xf32>
    %31 = tpu.iota {dimensions = array<i32: 1>} : vector<1x128xi32>
    %32 = vector.extract_strided_slice %30 {offsets = [0, 0], sizes = [16, 1], strides = [1, 1]} : vector<16x2xf32> to vector<16x1xf32>
    %33 = vector.broadcast %32 : vector<16x1xf32> to vector<16x128xf32>
    %34 = arith.mulf %1, %33 : vector<16x128xf32>
    %cst_17 = arith.constant dense<0.000000e+00> : vector<128xf32>
    %35 = vector.multi_reduction <add>, %34, %cst_17 [0] : vector<16x128xf32> to vector<128xf32>
    %36 = vector.shape_cast %35 : vector<128xf32> to vector<1x128xf32>
    %cst_18 = arith.constant 1.600000e+01 : f32
    %37 = vector.broadcast %cst_18 : f32 to vector<1x128xf32>
    %38 = arith.divf %36, %37 : vector<1x128xf32>
    %cst_19 = arith.constant dense<0xFF800000> : vector<128xf32>
    %39 = vector.multi_reduction <maximumf>, %34, %cst_19 [0] : vector<16x128xf32> to vector<128xf32>
    %40 = vector.shape_cast %39 : vector<128xf32> to vector<1x128xf32>
    %c0_20 = arith.constant 0 : index
    %c2 = arith.constant 2 : index
    %41 = memref.load %arg4[%c0_20, %c2] : memref<2x5xf32, #tpu.memory_space<smem>>
    %42 = vector.broadcast %41 : f32 to vector<1x128xf32>
    %43 = arith.mulf %38, %42 : vector<1x128xf32>
    %c1_21 = arith.constant 1 : index
    %c2_22 = arith.constant 2 : index
    %44 = memref.load %arg4[%c1_21, %c2_22] : memref<2x5xf32, #tpu.memory_space<smem>>
    %45 = vector.broadcast %44 : f32 to vector<1x128xf32>
    %46 = arith.mulf %40, %45 : vector<1x128xf32>
    %47 = arith.addf %43, %46 : vector<1x128xf32>
    %c2_i32 = arith.constant 2 : i32
    %48 = tpu.dynamic_rotate %38 by %c2_i32 dim 1 : vector<1x128xf32>, i32 -> vector<1x128xf32>
    %c2_i32_23 = arith.constant 2 : i32
    %49 = tpu.dynamic_rotate %40 by %c2_i32_23 dim 1 : vector<1x128xf32>, i32 -> vector<1x128xf32>
    %c2_i32_24 = arith.constant 2 : i32
    %50 = vector.broadcast %c2_i32_24 : i32 to vector<1x128xi32>
    %51 = arith.cmpi sge, %31, %50 : vector<1x128xi32>
    %c0_25 = arith.constant 0 : index
    %c0_26 = arith.constant 0 : index
    %52 = memref.load %arg4[%c0_25, %c0_26] : memref<2x5xf32, #tpu.memory_space<smem>>
    %53 = vector.broadcast %52 : f32 to vector<1x128xf32>
    %54 = arith.mulf %48, %53 : vector<1x128xf32>
    %c1_27 = arith.constant 1 : index
    %c0_28 = arith.constant 0 : index
    %55 = memref.load %arg4[%c1_27, %c0_28] : memref<2x5xf32, #tpu.memory_space<smem>>
    %56 = vector.broadcast %55 : f32 to vector<1x128xf32>
    %57 = arith.mulf %49, %56 : vector<1x128xf32>
    %58 = arith.addf %54, %57 : vector<1x128xf32>
    %cst_29 = arith.constant 0.000000e+00 : f32
    %59 = vector.broadcast %cst_29 : f32 to vector<1x128xf32>
    %60 = arith.select %51, %58, %59 : vector<1x128xi1>, vector<1x128xf32>
    %61 = arith.addf %47, %60 : vector<1x128xf32>
    %c1_i32 = arith.constant 1 : i32
    %62 = tpu.dynamic_rotate %38 by %c1_i32 dim 1 : vector<1x128xf32>, i32 -> vector<1x128xf32>
    %c1_i32_30 = arith.constant 1 : i32
    %63 = tpu.dynamic_rotate %40 by %c1_i32_30 dim 1 : vector<1x128xf32>, i32 -> vector<1x128xf32>
    %c1_i32_31 = arith.constant 1 : i32
    %64 = vector.broadcast %c1_i32_31 : i32 to vector<1x128xi32>
    %65 = arith.cmpi sge, %31, %64 : vector<1x128xi32>
    %c0_32 = arith.constant 0 : index
    %c1_33 = arith.constant 1 : index
    %66 = memref.load %arg4[%c0_32, %c1_33] : memref<2x5xf32, #tpu.memory_space<smem>>
    %67 = vector.broadcast %66 : f32 to vector<1x128xf32>
    %68 = arith.mulf %62, %67 : vector<1x128xf32>
    %c1_34 = arith.constant 1 : index
    %c1_35 = arith.constant 1 : index
    %69 = memref.load %arg4[%c1_34, %c1_35] : memref<2x5xf32, #tpu.memory_space<smem>>
    %70 = vector.broadcast %69 : f32 to vector<1x128xf32>
    %71 = arith.mulf %63, %70 : vector<1x128xf32>
    %72 = arith.addf %68, %71 : vector<1x128xf32>
    %cst_36 = arith.constant 0.000000e+00 : f32
    %73 = vector.broadcast %cst_36 : f32 to vector<1x128xf32>
    %74 = arith.select %65, %72, %73 : vector<1x128xi1>, vector<1x128xf32>
    %75 = arith.addf %61, %74 : vector<1x128xf32>
    %c127_i32 = arith.constant 127 : i32
    %76 = tpu.dynamic_rotate %38 by %c127_i32 dim 1 : vector<1x128xf32>, i32 -> vector<1x128xf32>
    %c127_i32_37 = arith.constant 127 : i32
    %77 = tpu.dynamic_rotate %40 by %c127_i32_37 dim 1 : vector<1x128xf32>, i32 -> vector<1x128xf32>
    %c127_i32_38 = arith.constant 127 : i32
    %78 = vector.broadcast %c127_i32_38 : i32 to vector<1x128xi32>
    %79 = arith.cmpi slt, %31, %78 : vector<1x128xi32>
    %c0_39 = arith.constant 0 : index
    %c3 = arith.constant 3 : index
    %80 = memref.load %arg4[%c0_39, %c3] : memref<2x5xf32, #tpu.memory_space<smem>>
    %81 = vector.broadcast %80 : f32 to vector<1x128xf32>
    %82 = arith.mulf %76, %81 : vector<1x128xf32>
    %c1_40 = arith.constant 1 : index
    %c3_41 = arith.constant 3 : index
    %83 = memref.load %arg4[%c1_40, %c3_41] : memref<2x5xf32, #tpu.memory_space<smem>>
    %84 = vector.broadcast %83 : f32 to vector<1x128xf32>
    %85 = arith.mulf %77, %84 : vector<1x128xf32>
    %86 = arith.addf %82, %85 : vector<1x128xf32>
    %cst_42 = arith.constant 0.000000e+00 : f32
    %87 = vector.broadcast %cst_42 : f32 to vector<1x128xf32>
    %88 = arith.select %79, %86, %87 : vector<1x128xi1>, vector<1x128xf32>
    %89 = arith.addf %75, %88 : vector<1x128xf32>
    %c126_i32 = arith.constant 126 : i32
    %90 = tpu.dynamic_rotate %38 by %c126_i32 dim 1 : vector<1x128xf32>, i32 -> vector<1x128xf32>
    %c126_i32_43 = arith.constant 126 : i32
    %91 = tpu.dynamic_rotate %40 by %c126_i32_43 dim 1 : vector<1x128xf32>, i32 -> vector<1x128xf32>
    %c126_i32_44 = arith.constant 126 : i32
    %92 = vector.broadcast %c126_i32_44 : i32 to vector<1x128xi32>
    %93 = arith.cmpi slt, %31, %92 : vector<1x128xi32>
    %c0_45 = arith.constant 0 : index
    %c4 = arith.constant 4 : index
    %94 = memref.load %arg4[%c0_45, %c4] : memref<2x5xf32, #tpu.memory_space<smem>>
    %95 = vector.broadcast %94 : f32 to vector<1x128xf32>
    %96 = arith.mulf %90, %95 : vector<1x128xf32>
    %c1_46 = arith.constant 1 : index
    %c4_47 = arith.constant 4 : index
    %97 = memref.load %arg4[%c1_46, %c4_47] : memref<2x5xf32, #tpu.memory_space<smem>>
    %98 = vector.broadcast %97 : f32 to vector<1x128xf32>
    %99 = arith.mulf %91, %98 : vector<1x128xf32>
    %100 = arith.addf %96, %99 : vector<1x128xf32>
    %cst_48 = arith.constant 0.000000e+00 : f32
    %101 = vector.broadcast %cst_48 : f32 to vector<1x128xf32>
    %102 = arith.select %93, %100, %101 : vector<1x128xi1>, vector<1x128xf32>
    %103 = arith.addf %89, %102 : vector<1x128xf32>
    %104 = arith.negf %103 : vector<1x128xf32>
    %105 = math.exp %104 : vector<1x128xf32>
    %cst_49 = arith.constant 1.000000e+00 : f32
    %106 = vector.broadcast %cst_49 : f32 to vector<1x128xf32>
    %107 = arith.addf %106, %105 : vector<1x128xf32>
    %108 = arith.divf %106, %107 : vector<1x128xf32>
    %109 = vector.broadcast %108 : vector<1x128xf32> to vector<16x128xf32>
    %110 = arith.mulf %34, %109 : vector<16x128xf32>
    %c0_50 = arith.constant 0 : index
    %c0_51 = arith.constant 0 : index
    %c0_52 = arith.constant 0 : index
    %111 = vector.load %arg5[%c0_50, %c0_51, %c0_52] : memref<2x16x128xf32, #tpu.memory_space<vmem>>, vector<1x16x128xf32>
    %112 = vector.shape_cast %111 : vector<1x16x128xf32> to vector<16x128xf32>
    %113 = vector.shape_cast %110 : vector<16x128xf32> to vector<1x16x128xf32>
    tpu.vector_store %arg5[%c0_50, %c0_51, %c0_52], %113 {strides = array<i32>} : memref<2x16x128xf32, #tpu.memory_space<vmem>>, vector<1x16x128xf32>,
    %114 = vector.extract_strided_slice %30 {offsets = [0, 1], sizes = [16, 1], strides = [1, 1]} : vector<16x2xf32> to vector<16x1xf32>
    %115 = vector.broadcast %114 : vector<16x1xf32> to vector<16x128xf32>
    %116 = arith.mulf %3, %115 : vector<16x128xf32>
    %cst_53 = arith.constant dense<0.000000e+00> : vector<128xf32>
    %117 = vector.multi_reduction <add>, %116, %cst_53 [0] : vector<16x128xf32> to vector<128xf32>
    %118 = vector.shape_cast %117 : vector<128xf32> to vector<1x128xf32>
    %cst_54 = arith.constant 1.600000e+01 : f32
    %119 = vector.broadcast %cst_54 : f32 to vector<1x128xf32>
    %120 = arith.divf %118, %119 : vector<1x128xf32>
    %cst_55 = arith.constant dense<0xFF800000> : vector<128xf32>
    %121 = vector.multi_reduction <maximumf>, %116, %cst_55 [0] : vector<16x128xf32> to vector<128xf32>
    %122 = vector.shape_cast %121 : vector<128xf32> to vector<1x128xf32>
    %c0_56 = arith.constant 0 : index
    %c2_57 = arith.constant 2 : index
    %123 = memref.load %arg4[%c0_56, %c2_57] : memref<2x5xf32, #tpu.memory_space<smem>>
    %124 = vector.broadcast %123 : f32 to vector<1x128xf32>
    %125 = arith.mulf %120, %124 : vector<1x128xf32>
    %c1_58 = arith.constant 1 : index
    %c2_59 = arith.constant 2 : index
    %126 = memref.load %arg4[%c1_58, %c2_59] : memref<2x5xf32, #tpu.memory_space<smem>>
    %127 = vector.broadcast %126 : f32 to vector<1x128xf32>
    %128 = arith.mulf %122, %127 : vector<1x128xf32>
    %129 = arith.addf %125, %128 : vector<1x128xf32>
    %c2_i32_60 = arith.constant 2 : i32
    %130 = tpu.dynamic_rotate %120 by %c2_i32_60 dim 1 : vector<1x128xf32>, i32 -> vector<1x128xf32>
    %c2_i32_61 = arith.constant 2 : i32
    %131 = tpu.dynamic_rotate %122 by %c2_i32_61 dim 1 : vector<1x128xf32>, i32 -> vector<1x128xf32>
    %c2_i32_62 = arith.constant 2 : i32
    %132 = vector.broadcast %c2_i32_62 : i32 to vector<1x128xi32>
    %133 = arith.cmpi sge, %31, %132 : vector<1x128xi32>
    %c0_63 = arith.constant 0 : index
    %c0_64 = arith.constant 0 : index
    %134 = memref.load %arg4[%c0_63, %c0_64] : memref<2x5xf32, #tpu.memory_space<smem>>
    %135 = vector.broadcast %134 : f32 to vector<1x128xf32>
    %136 = arith.mulf %130, %135 : vector<1x128xf32>
    %c1_65 = arith.constant 1 : index
    %c0_66 = arith.constant 0 : index
    %137 = memref.load %arg4[%c1_65, %c0_66] : memref<2x5xf32, #tpu.memory_space<smem>>
    %138 = vector.broadcast %137 : f32 to vector<1x128xf32>
    %139 = arith.mulf %131, %138 : vector<1x128xf32>
    %140 = arith.addf %136, %139 : vector<1x128xf32>
    %cst_67 = arith.constant 0.000000e+00 : f32
    %141 = vector.broadcast %cst_67 : f32 to vector<1x128xf32>
    %142 = arith.select %133, %140, %141 : vector<1x128xi1>, vector<1x128xf32>
    %143 = arith.addf %129, %142 : vector<1x128xf32>
    %c1_i32_68 = arith.constant 1 : i32
    %144 = tpu.dynamic_rotate %120 by %c1_i32_68 dim 1 : vector<1x128xf32>, i32 -> vector<1x128xf32>
    %c1_i32_69 = arith.constant 1 : i32
    %145 = tpu.dynamic_rotate %122 by %c1_i32_69 dim 1 : vector<1x128xf32>, i32 -> vector<1x128xf32>
    %c1_i32_70 = arith.constant 1 : i32
    %146 = vector.broadcast %c1_i32_70 : i32 to vector<1x128xi32>
    %147 = arith.cmpi sge, %31, %146 : vector<1x128xi32>
    %c0_71 = arith.constant 0 : index
    %c1_72 = arith.constant 1 : index
    %148 = memref.load %arg4[%c0_71, %c1_72] : memref<2x5xf32, #tpu.memory_space<smem>>
    %149 = vector.broadcast %148 : f32 to vector<1x128xf32>
    %150 = arith.mulf %144, %149 : vector<1x128xf32>
    %c1_73 = arith.constant 1 : index
    %c1_74 = arith.constant 1 : index
    %151 = memref.load %arg4[%c1_73, %c1_74] : memref<2x5xf32, #tpu.memory_space<smem>>
    %152 = vector.broadcast %151 : f32 to vector<1x128xf32>
    %153 = arith.mulf %145, %152 : vector<1x128xf32>
    %154 = arith.addf %150, %153 : vector<1x128xf32>
    %cst_75 = arith.constant 0.000000e+00 : f32
    %155 = vector.broadcast %cst_75 : f32 to vector<1x128xf32>
    %156 = arith.select %147, %154, %155 : vector<1x128xi1>, vector<1x128xf32>
    %157 = arith.addf %143, %156 : vector<1x128xf32>
    %c127_i32_76 = arith.constant 127 : i32
    %158 = tpu.dynamic_rotate %120 by %c127_i32_76 dim 1 : vector<1x128xf32>, i32 -> vector<1x128xf32>
    %c127_i32_77 = arith.constant 127 : i32
    %159 = tpu.dynamic_rotate %122 by %c127_i32_77 dim 1 : vector<1x128xf32>, i32 -> vector<1x128xf32>
    %c127_i32_78 = arith.constant 127 : i32
    %160 = vector.broadcast %c127_i32_78 : i32 to vector<1x128xi32>
    %161 = arith.cmpi slt, %31, %160 : vector<1x128xi32>
    %c0_79 = arith.constant 0 : index
    %c3_80 = arith.constant 3 : index
    %162 = memref.load %arg4[%c0_79, %c3_80] : memref<2x5xf32, #tpu.memory_space<smem>>
    %163 = vector.broadcast %162 : f32 to vector<1x128xf32>
    %164 = arith.mulf %158, %163 : vector<1x128xf32>
    %c1_81 = arith.constant 1 : index
    %c3_82 = arith.constant 3 : index
    %165 = memref.load %arg4[%c1_81, %c3_82] : memref<2x5xf32, #tpu.memory_space<smem>>
    %166 = vector.broadcast %165 : f32 to vector<1x128xf32>
    %167 = arith.mulf %159, %166 : vector<1x128xf32>
    %168 = arith.addf %164, %167 : vector<1x128xf32>
    %cst_83 = arith.constant 0.000000e+00 : f32
    %169 = vector.broadcast %cst_83 : f32 to vector<1x128xf32>
    %170 = arith.select %161, %168, %169 : vector<1x128xi1>, vector<1x128xf32>
    %171 = arith.addf %157, %170 : vector<1x128xf32>
    %c126_i32_84 = arith.constant 126 : i32
    %172 = tpu.dynamic_rotate %120 by %c126_i32_84 dim 1 : vector<1x128xf32>, i32 -> vector<1x128xf32>
    %c126_i32_85 = arith.constant 126 : i32
    %173 = tpu.dynamic_rotate %122 by %c126_i32_85 dim 1 : vector<1x128xf32>, i32 -> vector<1x128xf32>
    %c126_i32_86 = arith.constant 126 : i32
    %174 = vector.broadcast %c126_i32_86 : i32 to vector<1x128xi32>
    %175 = arith.cmpi slt, %31, %174 : vector<1x128xi32>
    %c0_87 = arith.constant 0 : index
    %c4_88 = arith.constant 4 : index
    %176 = memref.load %arg4[%c0_87, %c4_88] : memref<2x5xf32, #tpu.memory_space<smem>>
    %177 = vector.broadcast %176 : f32 to vector<1x128xf32>
    %178 = arith.mulf %172, %177 : vector<1x128xf32>
    %c1_89 = arith.constant 1 : index
    %c4_90 = arith.constant 4 : index
    %179 = memref.load %arg4[%c1_89, %c4_90] : memref<2x5xf32, #tpu.memory_space<smem>>
    %180 = vector.broadcast %179 : f32 to vector<1x128xf32>
    %181 = arith.mulf %173, %180 : vector<1x128xf32>
    %182 = arith.addf %178, %181 : vector<1x128xf32>
    %cst_91 = arith.constant 0.000000e+00 : f32
    %183 = vector.broadcast %cst_91 : f32 to vector<1x128xf32>
    %184 = arith.select %175, %182, %183 : vector<1x128xi1>, vector<1x128xf32>
    %185 = arith.addf %171, %184 : vector<1x128xf32>
    %186 = arith.negf %185 : vector<1x128xf32>
    %187 = math.exp %186 : vector<1x128xf32>
    %cst_92 = arith.constant 1.000000e+00 : f32
    %188 = vector.broadcast %cst_92 : f32 to vector<1x128xf32>
    %189 = arith.addf %188, %187 : vector<1x128xf32>
    %190 = arith.divf %188, %189 : vector<1x128xf32>
    %191 = vector.broadcast %190 : vector<1x128xf32> to vector<16x128xf32>
    %192 = arith.mulf %116, %191 : vector<16x128xf32>
    %c1_93 = arith.constant 1 : index
    %c0_94 = arith.constant 0 : index
    %c0_95 = arith.constant 0 : index
    %193 = vector.load %arg5[%c1_93, %c0_94, %c0_95] : memref<2x16x128xf32, #tpu.memory_space<vmem>>, vector<1x16x128xf32>
    %194 = vector.shape_cast %193 : vector<1x16x128xf32> to vector<16x128xf32>
    %195 = vector.shape_cast %192 : vector<16x128xf32> to vector<1x16x128xf32>
    tpu.vector_store %arg5[%c1_93, %c0_94, %c0_95], %195 {strides = array<i32>} : memref<2x16x128xf32, #tpu.memory_space<vmem>>, vector<1x16x128xf32>,
    return
  }
  func.func @transform_0(%arg0: i32) -> (i32, i32, i32) {
    %c0_i32 = arith.constant 0 : i32
    %c0_i32_0 = arith.constant 0 : i32
    %c0_i32_1 = arith.constant 0 : i32
    %c0_i32_2 = arith.constant 0 : i32
    return %c0_i32, %c0_i32_0, %c0_i32_1 : i32, i32, i32
  }
  func.func @transform_1(%arg0: i32) -> (i32, i32) {
    %c0_i32 = arith.constant 0 : i32
    %c0_i32_0 = arith.constant 0 : i32
    %c0_i32_1 = arith.constant 0 : i32
    return %c0_i32, %c0_i32_0 : i32, i32
  }
  func.func @transform_2(%arg0: i32) -> (i32, i32) {
    %c0_i32 = arith.constant 0 : i32
    %c0_i32_0 = arith.constant 0 : i32
    %c0_i32_1 = arith.constant 0 : i32
    return %c0_i32, %c0_i32_0 : i32, i32
  }
  func.func @transform_3(%arg0: i32) -> (i32, i32) {
    %c0_i32 = arith.constant 0 : i32
    %c0_i32_0 = arith.constant 0 : i32
    %c0_i32_1 = arith.constant 0 : i32
    return %c0_i32, %c0_i32_0 : i32, i32
  }
  func.func @transform_4(%arg0: i32) -> (i32, i32, i32) {
    %c0_i32 = arith.constant 0 : i32
    %c0_i32_0 = arith.constant 0 : i32
    %c0_i32_1 = arith.constant 0 : i32
    %c0_i32_2 = arith.constant 0 : i32
    return %c0_i32, %c0_i32_0, %c0_i32_1 : i32, i32, i32
  }
}

</mosaic_0001>

<bundles_post_ra>
// kernel: wkan_forward.1
= control target key start
LH: loop header
LB: loop body
LE: loop exit
PB: predicated region body
PF: predicated region fallthrough
CT: control target
= control target key end

     0   :  { %9 = vsyncpa [#allocation3], 0  ;;  %s858_s0 = inlined_call_operand.hbm [shape: f32[2,16,128], index: 0, kind: input, shape index: {}]   ;;  %s859_s1 = inlined_call_operand.hbm [shape: f32[16,16], index: 1, kind: input, shape index: {}]   ;;  %s860_s2 = inlined_call_operand.hbm [shape: f32[16,16], index: 2, kind: input, shape index: {}]   ;;  %s861_s3 = inlined_call_operand.vmem [shape: f32[2,5], index: 3, kind: input, shape index: {}]   ;;  %s862_s4 = inlined_call_operand.hbm [shape: f32[2,16,128], index: 4, kind: output, shape index: {}]  }
   0x1   :  { %10 = vsyncpa [#allocation7], 0 }
   0x2   :  { %11 = vsyncpa [#allocation5], 0 }
   0x3   :  { %12 = vsyncpa [#allocation4], 0  ;;  %s703_s15 = smov [#allocation6]   ;;  %s704_s17 = smov [#allocation2]  }
   0x4   :  { %s30_s16 = sshll.u32 %s703_s15, 4  ;;  %s18_s18 = sshll.u32 %s704_s17, 4  ;;  %s31_s16 = int_to_ptr.vmem [resolvable:$true] %s30_s16  ;;  %s19_s18 = int_to_ptr.vmem [resolvable:$true] %s18_s18 }
   0x5   :  { %s611_s19 = scalar_lea.vmem %s31_s16, 256  ;;  %p616_p1 = scmp.lt.s32.totalorder %s31_s16, %s31_s16 }
   0x6   :  { %p612_p0 = scmp.ne.s32.totalorder %s31_s16, %s611_s19  ;;  %p617_p2 = scmp.lt.s32.totalorder %s611_s19, %s611_s19 }
   0x8   :  { %p618_p3 = por %p617_p2, %p616_p1 }
   0xa   :  { %p619_p4 = pnand %p618_p3, %p612_p0 }
   0xc   :  { %622 = shalt.err (!%p619_p4)
}
   0xd   :  { %s705_s20 = smov 128   ;;  %s706_s21 = smov 8  }
   0xe   :  { %36 = dma.hbm_to_vmem [thread:$0]  %s859_s1, 256, %s31_s16, [#allocation7], %s705_s20, %s705_s20, %s706_s21  }
   0xf   :  { %s631_s24 = scalar_lea.vmem %s19_s18, 512  ;;  %p636_p6 = scmp.lt.s32.totalorder %s19_s18, %s19_s18 }
  0x10   :  { %p632_p5 = scmp.ne.s32.totalorder %s19_s18, %s631_s24  ;;  %p637_p7 = scmp.lt.s32.totalorder %s631_s24, %s631_s24 }
  0x12   :  { %p638_p8 = por %p637_p7, %p636_p6 }
  0x14   :  { %p639_p9 = pnand %p638_p8, %p632_p5 }
  0x16   :  { %642 = shalt.err (!%p639_p9)
}
  0x17   :  { %24 = dma.hbm_to_vmem [thread:$0]  %s858_s0, 512, %s19_s18, [#allocation3], %s705_s20, %s705_s20, %s706_s21  }
  0x18   :  { %s55_s29 = sshll.u32 %s861_s3, 4  ;;  %s707_s30 = smov [#allocation8]   ;;  %s56_s29 = int_to_ptr.vmem [resolvable:$true] %s55_s29 }
  0x19   :  { %s42_s1 = sshll.u32 %s707_s30, 4  ;;  %s43_s1 = int_to_ptr.vmem [resolvable:$true] %s42_s1 }
  0x1a   :  { %s651_s5 = scalar_lea.vmem %s43_s1, 256  ;;  %p656_p11 = scmp.lt.s32.totalorder %s43_s1, %s43_s1 }
  0x1b   :  { %p652_p10 = scmp.ne.s32.totalorder %s43_s1, %s651_s5  ;;  %p657_p12 = scmp.lt.s32.totalorder %s651_s5, %s651_s5 }
  0x1d   :  { %p658_p13 = por %p657_p12, %p656_p11 }
  0x1f   :  { %p659_p0 = pnand %p658_p13, %p652_p10 }
  0x21   :  { %662 = shalt.err (!%p659_p0)
}
  0x22   :  { %48 = dma.hbm_to_vmem [thread:$0]  %s860_s2, 256, %s43_s1, [#allocation7], %s705_s20, %s705_s20, %s706_s21  }
  0x23   :  { %s663_s7 = scalar_lea.vmem %s56_s29, 32  ;;  %p668_p2 = scmp.lt.s32.totalorder %s56_s29, %s56_s29 }
  0x24   :  { %p664_p1 = scmp.ne.s32.totalorder %s56_s29, %s663_s7  ;;  %p669_p3 = scmp.lt.s32.totalorder %s663_s7, %s663_s7 }
  0x26   :  { %p670_p4 = por %p669_p3, %p668_p2 }
  0x28   :  { %p671_p5 = pnand %p670_p4, %p664_p1 }
  0x2a   :  { %674 = shalt.err (!%p671_p5)
}
  0x2b   :  { %s708_s3 = smov [#allocation9]  }
  0x2c   :  { %58 = dma.vmem_to_smem %s56_s29, 32, %s708_s3, [#allocation5]  }
  0x2d   :  { %695 = dma.done.wait [#allocation3], 512  }
  0x2e   :  { %696 = vsyncadd [#allocation3], 4294966784 }
  0x2f   :  { %697 = dma.done.wait [#allocation7], 512  }
  0x30   :  { %698 = vsyncadd [#allocation7], 4294966784 }
  0x31   :  { %699 = dma.done.wait [#allocation5], 32  }
  0x32   :  { %700 = vsyncadd [#allocation5], 4294967264 }
  0x33   :  { %71 = sfence }
  0x34   :  { %v762_v0 = vld [vmem:[#allocation2 + $0x8] sm:$0xff]  ;;  %v764_v1 = vld [vmem:[#allocation2] sm:$0xff]  ;;  %v768_v2 = vld [vmem:[#allocation2 + $0x18] sm:$0xff]  ;;  %vm109_vm0 = vcmask 130048   ;;  %vm98_vm1 = vcmask 7168   ;;  %vm101_vm2 = vcmask 15360  }
  0x35   :  { %79 = vadd.xlane.f32.xlu0 %v762_v0  ;;  %77 = vadd.xlane.f32.xlu1 %v764_v1  ;;  %v770_v3 = vld [vmem:[#allocation2 + $0x10] sm:$0xff]  ;;  %v107_v4 = vld [vmem:[#allocation6] sm:$0xff]  ;;  %vm104_vm3 = vcmask 23552   ;;  %v108_v23 = vld [vmem:[#allocation6 + $0x8] sm:$0xff]  ;;  %s709_s2 = smov 126   ;;  %v710_v32 = vmov 0  }
  0x36   :  { %561 = vmatprep.mubr.msk.f32.mxu0 %vm109_vm0, %v107_v4  ;;  %v193_v24 = vld [vmem:[#allocation8] sm:$0xff]  ;;  %v194_v29 = vld [vmem:[#allocation8 + $0x8] sm:$0xff]  ;;  %584 = vset.pattern.permute.xlu1 %v710_v32  ;;  %v711_v33 = vmov 1   ;;  %s800_s8 = sld [smem:[#allocation9 + $0x82]]  ;;  %s712_s10 = smov 2  }
  0x37   :  { %568 = vmatprep.mubr.msk.f32.mxu1 %vm109_vm0, %v193_v24  ;;  %585 = vset.pattern.permute.xlu0 %v711_v33  ;;  %s806_s9 = sld [smem:[#allocation9 + $0x2]]  ;;  %s713_s11 = smov 1  }
  0x38   :  { %s714_s12 = smov 127   ;;  %s340_s13 = sld [smem:[#allocation9]] }
  0x39   :  { %86 = vadd.xlane.f32.xlu0 %v768_v2  ;;  %84 = vadd.xlane.f32.xlu1 %v770_v3  ;;  %s531_s14 = sld [smem:[#allocation9 + $0x80]]  ;;  %s715_s23 = smov [#allocation10]  }
  0x3a   :  { %s818_s15 = sld [smem:[#allocation9 + $0x1]]  ;;  %s509_s24 = sshll.u32 %s715_s23, 4  ;;  %s510_s24 = int_to_ptr.vmem [resolvable:$true] %s509_s24 }
  0x3b   :  { %s820_s16 = sld [smem:[#allocation9 + $0x81]]  ;;  %s675_s25 = scalar_lea.vmem %s510_s24, 512 }
  0x3c   :  { %s822_s17 = sld [smem:[#allocation9 + $0x3]]  ;;  %p676_p6 = scmp.ne.s32.totalorder %s510_s24, %s675_s25 }
  0x3d   :  { %92 = vmax.xlane.f32.xlu0 %v762_v0  ;;  %96 = vmax.xlane.f32.xlu1 %v768_v2  ;;  %s824_s18 = sld [smem:[#allocation9 + $0x83]]  ;;  %p680_p7 = scmp.lt.s32.totalorder %s510_s24, %s510_s24 }
  0x3e   :  { %s827_s19 = sld [smem:[#allocation9 + $0x84]]  ;;  %p681_p8 = scmp.lt.s32.totalorder %s675_s25, %s675_s25 }
  0x3f   :  { %s832_s22 = sld [smem:[#allocation9 + $0x4]] }
  0x40   :  { %p682_p9 = por %p681_p8, %p680_p7 }
  0x41   :  { %90 = vmax.xlane.f32.xlu0 %v764_v1  ;;  %94 = vmax.xlane.f32.xlu1 %v770_v3 }
  0x42   :  { %p683_p10 = pnand %p682_p9, %p676_p6 }
  0xbe   :  { %v80_v5 = vpop.xlane.xlu0 %79  ;;  %v78_v6 = vpop.xlane.xlu1 %77 }
  0xbf   :  { %v83_v9 = vmul.f32 0.0078125, %v80_v5  ;;  %v82_v16 = vmul.f32 0.0078125, %v78_v6 }
  0xc2   :  { %v87_v7 = vpop.xlane.xlu0 %86  ;;  %v85_v8 = vpop.xlane.xlu1 %84 }
  0xc3   :  { %v89_v10 = vmul.f32 0.0078125, %v87_v7  ;;  %v88_v12 = vmul.f32 0.0078125, %v85_v8 }
  0xc5   :  { %v100_v11 = vsel %vm98_vm1, %v83_v9, %v89_v10  ;;  %v99_v19 = vsel %vm98_vm1, %v82_v16, %v88_v12 }
  0xc6   :  { %v93_v13 = vpop.xlane.xlu0 %92  ;;  %v97_v14 = vpop.xlane.xlu1 %96 }
  0xc7   :  { %v103_v15 = vsel %vm101_vm2, %v100_v11, %v93_v13 }
  0xc8   :  { %v106_v17 = vsel %vm104_vm3, %v103_v15, %v97_v14  ;;  %v329_v14 = vstv %s806_s9  ;;  %v332_v15 = vstv %s800_s8 }
  0xc9   :  { %557 = vmatprep.subr.mxu0 %v106_v17 }
  0xca   :  { %v91_v18 = vpop.xlane.xlu0 %90  ;;  %558 = vmatpush3.msra.mxu0 %v106_v17  ;;  %v95_v20 = vpop.xlane.xlu1 %94 }
  0xcb   :  { %v102_v21 = vsel %vm101_vm2, %v99_v19, %v91_v18 }
  0xcc   :  { %v105_v22 = vsel %vm104_vm3, %v102_v21, %v95_v20 }
  0xcd   :  { %559 = vmatprep.subr.mxu0 %v105_v22 }
  0xce   :  { %560 = vmatpush3.msra.mxu0 %v105_v22 }
  0xcf   :  { %562 = vmatmul.mubr.msk.f32.vlgmr.msra.gmra.mxu0 %vm109_vm0, %v108_v23 }
 0x18f   :  { %v563_v25 = vpop.f32.mrf.mxu0 }
 0x190   :  { %v192_v26 = vmax.f32 %v563_v25, 0.0 }
 0x191   :  { %v182_v27 = vpop.f32.mrf.mxu0 }
 0x192   :  { %v191_v28 = vmax.f32 %v182_v27, 0.0  ;;  %564 = vmatprep.subr.mxu1 %v192_v26 }
 0x193   :  { %565 = vmatpush3.msra.mxu1 %v192_v26 }
 0x194   :  { %566 = vmatprep.subr.mxu1 %v191_v28 }
 0x195   :  { %567 = vmatpush3.msra.mxu1 %v191_v28 }
 0x196   :  { %569 = vmatmul.mubr.msk.f32.vlgmr.msra.gmra.mxu1 %vm109_vm0, %v194_v29 }
 0x256   :  { %v570_v30 = vpop.f32.mrf.mxu1 }
 0x257   :  { %280 = vrot.lane.b32.xlu1 %v570_v30, %s709_s2 }
 0x258   :  { %v267_v31 = vpop.f32.mrf.mxu1 }
 0x259   :  { %278 = vrot.lane.b32.xlu0 %v267_v31, %s709_s2 }
 0x2c9   :  { %v281_v34 = vpop.permute.xlu1 %280 }
 0x2ca   :  { %v285_v35 = vadd.f32 %v570_v30, %v281_v34  ;;  %v298_v34 = vlaneseq }
 0x2cb   :  { %v279_v36 = vpop.permute.xlu0 %278 }
 0x2cc   :  { %v528_v37 = vmul.f32 -1.442695, %v285_v35  ;;  %v284_v38 = vadd.f32 %v279_v36, %v267_v31  ;;  %v341_v35 = vstv %s340_s13 }
 0x2ce   :  { %587 = vpow2.f32 %v528_v37  ;;  %v527_v39 = vmul.f32 -1.442695, %v284_v38  ;;  %v344_v37 = vstv %s531_s14  ;;  %v355_v38 = vstv %s818_s15 }
 0x2d0   :  { %589 = vpow2.f32 %v527_v39 }
 0x2db   :  { %v588_v40 = vpop.eup %587 }
 0x2dc   :  { %v293_v41 = vadd.f32 1.0, %v588_v40 }
 0x2dd   :  { %v590_v42 = vpop.eup %589 }
 0x2de   :  { %591 = vrcp.f32 %v293_v41  ;;  %v292_v43 = vadd.f32 1.0, %v590_v42  ;;  %v299_v41 = vand.u32 127, %v298_v34  ;;  %v358_v42 = vstv %s820_s16 }
 0x2e0   :  { %593 = vrcp.f32 %v292_v43  ;;  %vm339_vm4 = vcmp.ge.s32.totalorder %v299_v41, 2  ;;  %vm353_vm5 = vcmp.ge.s32.totalorder %v299_v41, 1  ;;  %vm367_vm6 = vcmp.lt.s32.totalorder %v299_v41, 127 }
 0x2e1   :  { %vm381_vm7 = vcmp.lt.s32.totalorder %v299_v41, 126 }
 0x2eb   :  { %v592_v44 = vpop.eup %591 }
 0x2ec   :  { %307 = vperm.xlu1 %584, %v592_v44  }
 0x2ed   :  { %v594_v45 = vpop.eup %593 }
 0x2ee   :  { %406 = vperm.xlu0 %585, %v594_v45  }
 0x2f0   :  { %302 = vperm.xlu1 %584, %v594_v45  }
 0x2f4   :  { %586 = vset.pattern.permute.xlu1 %v711_v33 }
 0x2f5   :  { %410 = vperm.xlu1 %586, %v592_v44   ;;  %v369_v44 = vstv %s822_s17 }
 0x367   :  { %v308_v46 = vpop.permute.xlu1 %307 }
 0x368   :  { %v785_v48 = vmul.f32 %v308_v46, %v762_v0 }
 0x369   :  { %v407_v50 = vpop.permute.xlu0 %406 }
 0x36a   :  { %v795_v56 = vmul.f32 %v407_v50, %v770_v3  ;;  %v372_v50 = vstv %s824_s18 }
 0x36b   :  { %v303_v47 = vpop.permute.xlu1 %302 }
 0x36c   :  { %v788_v49 = vmul.f32 %v303_v47, %v764_v1 }
 0x36e   :  { %v312_v51 = vadd.f32 %v785_v48, %v788_v49  ;;  %v321_v52 = vmax.f32 %v788_v49, %v785_v48 }
 0x370   :  { %v313_v53 = vrot.slane %v312_v51, 4  ;;  %v322_v54 = vrot.slane %v321_v52, 4  ;;  %v411_v55 = vpop.permute.xlu1 %410 }
 0x371   :  { %v798_v57 = vmul.f32 %v411_v55, %v768_v2 }
 0x372   :  { %v314_v58 = vadd.f32 %v313_v53, %v312_v51  ;;  %v323_v59 = vmax.f32 %v321_v52, %v322_v54 }
 0x373   :  { %v415_v60 = vadd.f32 %v798_v57, %v795_v56  ;;  %v423_v61 = vmax.f32 %v795_v56, %v798_v57 }
 0x374   :  { %v315_v62 = vrot.slane %v314_v58, 2  ;;  %v324_v63 = vrot.slane %v323_v59, 2 }
 0x375   :  { %v416_v0 = vrot.slane %v415_v60, 4  ;;  %v424_v1 = vrot.slane %v423_v61, 4 }
 0x376   :  { %v316_v2 = vadd.f32 %v315_v62, %v314_v58  ;;  %v325_v3 = vmax.f32 %v323_v59, %v324_v63 }
 0x377   :  { %v417_v4 = vadd.f32 %v416_v0, %v415_v60  ;;  %v425_v5 = vmax.f32 %v423_v61, %v424_v1 }
 0x378   :  { %v317_v6 = vrot.slane %v316_v2, 1  ;;  %v326_v7 = vrot.slane %v325_v3, 1 }
 0x379   :  { %v418_v8 = vrot.slane %v417_v4, 2  ;;  %v426_v9 = vrot.slane %v425_v5, 2 }
 0x37a   :  { %v318_v10 = vadd.f32 %v317_v6, %v316_v2  ;;  %v327_v11 = vmax.f32 %v325_v3, %v326_v7  ;;  %v383_v6 = vstv %s832_s22 }
 0x37b   :  { %v419_v12 = vadd.f32 %v418_v8, %v417_v4  ;;  %v427_v13 = vmax.f32 %v425_v5, %v426_v9  ;;  %v386_v4 = vstv %s827_s19 }
 0x37c   :  { %v320_v16 = vmul.f32 0.0625, %v318_v10  ;;  %337 = vrot.lane.b32.xlu0 %v327_v11, %s712_s10  ;;  %v333_v20 = vmul.f32 %v332_v15, %v327_v11 }
 0x37d   :  { %v420_v17 = vrot.slane %v419_v12, 1  ;;  %v428_v18 = vrot.slane %v427_v13, 1 }
 0x37e   :  { %335 = vrot.lane.b32.xlu1 %v320_v16, %s712_s10  ;;  %v330_v19 = vmul.f32 %v329_v14, %v320_v16 }
 0x37f   :  { %v421_v21 = vadd.f32 %v420_v17, %v419_v12  ;;  %v429_v22 = vmax.f32 %v427_v13, %v428_v18 }
 0x380   :  { %v810_v23 = vadd.f32 %v333_v20, %v330_v19 }
 0x381   :  { %v422_v24 = vmul.f32 0.0625, %v421_v21  ;;  %439 = vrot.lane.b32.xlu0 %v429_v22, %s712_s10  ;;  %v435_v26 = vmul.f32 %v429_v22, %v332_v15 }
 0x383   :  { %437 = vrot.lane.b32.xlu1 %v422_v24, %s712_s10  ;;  %v432_v25 = vmul.f32 %v422_v24, %v329_v14 }
 0x385   :  { %351 = vrot.lane.b32.xlu0 %v327_v11, %s713_s11  ;;  %v812_v27 = vadd.f32 %v435_v26, %v432_v25 }
 0x387   :  { %349 = vrot.lane.b32.xlu1 %v320_v16, %s713_s11 }
 0x389   :  { %452 = vrot.lane.b32.xlu0 %v429_v22, %s713_s11 }
 0x38b   :  { %450 = vrot.lane.b32.xlu1 %v422_v24, %s713_s11 }
 0x38d   :  { %365 = vrot.lane.b32.xlu0 %v327_v11, %s714_s12 }
 0x38f   :  { %363 = vrot.lane.b32.xlu1 %v320_v16, %s714_s12 }
 0x391   :  { %465 = vrot.lane.b32.xlu0 %v429_v22, %s714_s12 }
 0x393   :  { %463 = vrot.lane.b32.xlu1 %v422_v24, %s714_s12 }
 0x395   :  { %379 = vrot.lane.b32.xlu0 %v327_v11, %s709_s2 }
 0x397   :  { %377 = vrot.lane.b32.xlu1 %v320_v16, %s709_s2 }
 0x399   :  { %478 = vrot.lane.b32.xlu0 %v429_v22, %s709_s2 }
 0x39b   :  { %476 = vrot.lane.b32.xlu1 %v422_v24, %s709_s2 }
 0x3ee   :  { %v338_v28 = vpop.permute.xlu0 %337 }
 0x3ef   :  { %v345_v45 = vmul.f32 %v344_v37, %v338_v28 }
 0x3f0   :  { %v336_v29 = vpop.permute.xlu1 %335 }
 0x3f1   :  { %v342_v40 = vmul.f32 %v341_v35, %v336_v29 }
 0x3f3   :  { %v440_v30 = vpop.permute.xlu0 %439  ;;  %v346_v52 = vadd.f32 %v345_v45, %v342_v40 }
 0x3f4   :  { %v446_v55 = vmul.f32 %v440_v30, %v344_v37 }
 0x3f5   :  { %v438_v31 = vpop.permute.xlu1 %437  ;;  %v347_v0 = vsel %vm339_vm4, %v346_v52, 0.0 }
 0x3f6   :  { %v443_v47 = vmul.f32 %v438_v31, %v341_v35  ;;  %v348_v10 = vadd.f32 %v347_v0, %v810_v23 }
 0x3f7   :  { %v352_v32 = vpop.permute.xlu0 %351 }
 0x3f8   :  { %v359_v53 = vmul.f32 %v358_v42, %v352_v32  ;;  %v447_v62 = vadd.f32 %v446_v55, %v443_v47 }
 0x3f9   :  { %v350_v33 = vpop.permute.xlu1 %349 }
 0x3fa   :  { %v356_v46 = vmul.f32 %v355_v38, %v350_v33  ;;  %v448_v11 = vsel %vm339_vm4, %v447_v62, 0.0 }
 0x3fb   :  { %v453_v36 = vpop.permute.xlu0 %452  ;;  %v449_v21 = vadd.f32 %v448_v11, %v812_v27 }
 0x3fc   :  { %v360_v59 = vadd.f32 %v359_v53, %v356_v46  ;;  %v459_v1 = vmul.f32 %v453_v36, %v358_v42  ;;  %v398_v42 = vshrl.u32 %v298_v34, 7 }
 0x3fd   :  { %v451_v39 = vpop.permute.xlu1 %450 }
 0x3fe   :  { %v456_v60 = vmul.f32 %v451_v39, %v355_v38  ;;  %v361_v7 = vsel %vm353_vm5, %v360_v59, 0.0 }
 0x3ff   :  { %v366_v43 = vpop.permute.xlu0 %365  ;;  %v362_v17 = vadd.f32 %v361_v7, %v348_v10 }
 0x400   :  { %v373_v61 = vmul.f32 %v372_v50, %v366_v43  ;;  %v460_v8 = vadd.f32 %v459_v1, %v456_v60  ;;  %v399_v43 = vsub.s32 0, %v398_v42 }
 0x401   :  { %v364_v51 = vpop.permute.xlu1 %363 }
 0x402   :  { %v370_v54 = vmul.f32 %v369_v44, %v364_v51  ;;  %v461_v19 = vsel %vm353_vm5, %v460_v8, 0.0 }
 0x403   :  { %v466_v58 = vpop.permute.xlu0 %465  ;;  %v462_v29 = vadd.f32 %v461_v19, %v449_v21 }
 0x404   :  { %v374_v2 = vadd.f32 %v373_v61, %v370_v54  ;;  %v472_v9 = vmul.f32 %v466_v58, %v372_v50 }
 0x405   :  { %v464_v63 = vpop.permute.xlu1 %463 }
 0x406   :  { %v469_v3 = vmul.f32 %v464_v63, %v369_v44  ;;  %v375_v13 = vsel %vm367_vm6, %v374_v2, 0.0 }
 0x407   :  { %v380_v5 = vpop.permute.xlu0 %379  ;;  %v376_v22 = vadd.f32 %v375_v13, %v362_v17 }
 0x408   :  { %v473_v14 = vadd.f32 %v472_v9, %v469_v3  ;;  %v387_v15 = vmul.f32 %v386_v4, %v380_v5 }
 0x409   :  { %v378_v12 = vpop.permute.xlu1 %377 }
 0x40a   :  { %v384_v16 = vmul.f32 %v383_v6, %v378_v12  ;;  %v474_v23 = vsel %vm367_vm6, %v473_v14, 0.0 }
 0x40b   :  { %v479_v18 = vpop.permute.xlu0 %478  ;;  %v475_v32 = vadd.f32 %v474_v23, %v462_v29 }
 0x40c   :  { %v388_v20 = vadd.f32 %v387_v15, %v384_v16  ;;  %v485_v26 = vmul.f32 %v479_v18, %v386_v4 }
 0x40d   :  { %v477_v24 = vpop.permute.xlu1 %476 }
 0x40e   :  { %v389_v25 = vsel %vm381_vm7, %v388_v20, 0.0  ;;  %v482_v28 = vmul.f32 %v477_v24, %v383_v6 }
 0x40f   :  { %v390_v30 = vadd.f32 %v389_v25, %v376_v22 }
 0x410   :  { %v486_v31 = vadd.f32 %v485_v26, %v482_v28 }
 0x411   :  { %v538_v33 = vmul.f32 -1.442695, %v390_v30 }
 0x412   :  { %v487_v35 = vsel %vm381_vm7, %v486_v31, 0.0 }
 0x413   :  { %595 = vpow2.f32 %v538_v33  ;;  %v488_v36 = vadd.f32 %v487_v35, %v475_v32 }
 0x415   :  { %v548_v37 = vmul.f32 -1.442695, %v488_v36 }
 0x417   :  { %597 = vpow2.f32 %v548_v37 }
 0x420   :  { %v596_v27 = vpop.eup %595 }
 0x421   :  { %v394_v38 = vadd.f32 1.0, %v596_v27 }
 0x423   :  { %599 = vrcp.f32 %v394_v38 }
 0x424   :  { %v598_v39 = vpop.eup %597 }
 0x425   :  { %v492_v40 = vadd.f32 1.0, %v598_v39 }
 0x427   :  { %601 = vrcp.f32 %v492_v40 }
 0x430   :  { %v600_v44 = vpop.eup %599 }
 0x431   :  { %v400_v45 = vrot.slane %v600_v44, %v399_v43 }
 0x433   :  { %v401_v46 = vmul.f32 %v400_v45, %v788_v49  ;;  %v402_v41 = vmul.f32 %v400_v45, %v785_v48 }
 0x434   :  { %v602_v47 = vpop.eup %601 }
 0x435   :  { %403 = vst [vmem:[#allocation10] sm:$0xff] %v401_v46  ;;  %404 = vst [vmem:[#allocation10 + $0x8] sm:$0xff] %v402_v41  ;;  %v498_v50 = vrot.slane %v602_v47, %v399_v43 }
 0x437   :  { %v499_v51 = vmul.f32 %v498_v50, %v795_v56  ;;  %v500_v52 = vmul.f32 %v498_v50, %v798_v57 }
 0x439   :  { %502 = vst [vmem:[#allocation10 + $0x10] sm:$0xff] %v499_v51  ;;  %503 = vst [vmem:[#allocation10 + $0x18] sm:$0xff] %v500_v52 }
 0x43a   :  { %686 = shalt.err (!%p683_p10)
}
 0x43b   :  { %515 = dma.vmem_to_hbm [thread:$0]  %s510_s24, 512, %s862_s4, [#allocation4], %s705_s20, %s705_s20, %s706_s21  }
 0x43c   :  { %701 = dma.done.wait [#allocation4], 512  }
 0x43d   :  { %702 = vsyncadd [#allocation4], 4294966784 }
 0x43e   :  { %519 = vsyncpa [#allocation3], 1 }
 0x43f   :  { %520 = vsyncpa [#allocation7], 1 }
 0x440   :  { %521 = vsyncpa [#allocation4], 1 }
 0x441   :  { %522 = vsyncpa [#allocation5], 1 }

</bundles_post_ra>
